<compile_context>
chip_gen: v7x
topology: tpu7x:2x2x1
jax: 0.10.0
libtpu: 0.0.40
codegen_flags: <defaults>
</compile_context>

<pallas_src>
import functools

import jax
import jax.numpy as jnp
from jax import lax
from jax.experimental import pallas as pl
from jax.experimental.pallas import tpu as pltpu


# ------------------------------ FPS kernel ---------------------------------
def _fps_kernel(psm_ref, p_ref, idx_ref, *, num_groups, num_points):
    # psm_ref: (1, 3, N)    f32 SMEM — xyz rows, scalar-indexed coordinate fetch
    # p_ref  : (1, 24, N/8) f32 VMEM — coord d lives in rows d*8..d*8+7; point n
    #                                  sits at (n // (N/8), n % (N/8))
    # idx_ref: (1, 1, G)  int32 SMEM — selected point indices (output)
    G = num_groups
    N = num_points
    Nf = N // 8

    p0 = p_ref[0, 0:8, :]
    p1 = p_ref[0, 8:16, :]
    p2 = p_ref[0, 16:24, :]
    flat_idx = (lax.broadcasted_iota(jnp.int32, (8, Nf), 0) * Nf
                + lax.broadcasted_iota(jnp.int32, (8, Nf), 1))

    idx_ref[0, 0, 0] = jnp.int32(0)          # CUDA FPS always starts at point 0

    def body(j, carry):
        dist, far = carry
        # coordinates of the previously selected point: 3 scalar SMEM reads
        c0 = psm_ref[0, 0, far]
        c1 = psm_ref[0, 1, far]
        c2 = psm_ref[0, 2, far]
        d0 = p0 - c0
        d1 = p1 - c1
        d2 = p2 - c2
        d = d0 * d0 + d1 * d1 + d2 * d2
        dist = jnp.minimum(dist, d)
        mx = jnp.max(dist)
        # lowest index attaining the max min-distance (deterministic tie-break;
        # may differ from the CUDA reduction's tie choice on exact ties)
        far_new = jnp.min(jnp.where(dist == mx, flat_idx, N)).astype(jnp.int32)
        idx_ref[0, 0, j] = far_new           # scalar SMEM store
        return dist, far_new

    dist0 = jnp.full((8, Nf), jnp.inf, dtype=jnp.float32)
    _ = lax.fori_loop(1, G, body, (dist0, jnp.int32(0)))


def furthest_point_sample(p_t, num_groups):
    """p_t: (B, 3, N) f32 -> idx: (B, 1, G) int32 (FPS, seeded at point 0)."""
    B, _, N = p_t.shape
    assert N % 8 == 0, "FPS kernel expects N to be a multiple of 8"
    Nf = N // 8
    # fold N into (8, N//8) so every vreg uses all 8 sublanes (one XLA reshape)
    p_fold = p_t.reshape(B, 3, 8, Nf).reshape(B, 24, Nf)

    kernel = functools.partial(_fps_kernel, num_groups=num_groups, num_points=N)
    return pl.pallas_call(
        kernel,
        out_shape=jax.ShapeDtypeStruct((B, 1, num_groups), jnp.int32),
        grid=(B,),
        in_specs=[
            pl.BlockSpec((1, 3, N), lambda b: (b, 0, 0),
                         memory_space=pltpu.MemorySpace.SMEM),
            pl.BlockSpec((1, 24, Nf), lambda b: (b, 0, 0)),
        ],
        out_specs=pl.BlockSpec((1, 1, num_groups), lambda b: (b, 0, 0),
                               memory_space=pltpu.MemorySpace.SMEM),
        compiler_params=pltpu.CompilerParams(dimension_semantics=("parallel",)),
    )(p_t, p_fold)


# ------------------------ ball-query + group kernel ------------------------
def _cumsum_rows(x):
    """Inclusive prefix sum along axis 0 (log-step scan; only slices/concats)."""
    n = x.shape[0]
    s = 1
    while s < n:
        shifted = jnp.concatenate(
            [jnp.zeros((s,) + x.shape[1:], x.dtype), x[0:n - s]], axis=0)
        x = x + shifted
        s *= 2
    return x


def _group_kernel(idx_ref, px_ref, out_ref, cen_ref, *,
                  radius, group_size, slot_chunk):
    # idx_ref: (1, 1, Gt)      int32  FPS indices for this group tile
    # px_ref : (1, 8+C, N)     f32    rows 0:3 xyz, 3:8 zero pad, 8: features
    # out_ref: (1, S, 8+C, Gt) f32    per-slot [rel-xyz | pad | grouped feats]
    # cen_ref: (1, 8+C, Gt)    f32    [center xyz | pad | center feats]
    f32 = jnp.float32
    S = group_size
    K = slot_chunk

    lhs = px_ref[0]                                    # (R, N) fused gather LHS
    idx = idx_ref[0]                                   # (1, Gt)
    R, N = lhs.shape
    Gt = idx.shape[1]

    iota_ng = lax.broadcasted_iota(jnp.int32, (N, Gt), 0)

    # ---- centers: ONE fused one-hot gather on the MXU (xyz + feats together)
    ohc = (iota_ng == idx).astype(f32)                 # (N, Gt)
    center_all = jnp.dot(lhs, ohc, preferred_element_type=f32)   # (R, Gt)
    cen_ref[0] = center_all
    center_t = center_all[0:3, :]                      # (3, Gt)

    # ---- point coordinates as sublane columns (tile-aligned (8, N) transpose;
    #      replaces the lane-padded (N, 3) HBM/VMEM stream of v2)
    p_cols = jnp.transpose(px_ref[0, 0:8, :], (1, 0))  # (N, 8)

    # ---- coordinate-wise squared distances (no catastrophic cancellation)
    d2 = jnp.zeros((N, Gt), f32)
    for d in range(3):
        diff = p_cols[:, d:d + 1] - center_t[d:d + 1, :]
        d2 = d2 + diff * diff
    within = d2 < (radius * radius)                    # (N, Gt)

    # ---- rank-based ball query: slot k holds the (k+1)-th in-ball point in
    #      scan order; slots past the count repeat the first in-ball point
    #      (CUDA ball_query semantics).  One scan replaces S min-reductions.
    rank = _cumsum_rows(within.astype(jnp.int32))      # (N, Gt)
    count = rank[N - 1:N, :]                           # (1, Gt) in-ball count
    first_f = (within & (rank == 1)).astype(f32)       # (N, Gt)
    # an empty ball is only reachable for radius == 0; fall back to the center
    # itself so the relative xyz stays 0 (inside the ball) instead of point 0.
    first_f = jnp.where(count >= 1, first_f, ohc)

    # subtract the center xyz from the xyz rows only
    offs = jnp.concatenate([center_t, jnp.zeros((R - 3, Gt), f32)], axis=0)

    # ---- slot-batched fused gathers: K slots -> one (R,N) x (N,K*Gt) matmul
    for k0 in range(0, S, K):
        ohs = []
        for k in range(k0, k0 + K):
            mk = (within & (rank == k + 1)).astype(f32)
            ohs.append(jnp.where(count >= k + 1, mk, first_f))
        rhs = ohs[0] if K == 1 else jnp.concatenate(ohs, axis=1)   # (N, K*Gt)
        res = jnp.dot(lhs, rhs, preferred_element_type=f32)        # (R, K*Gt)
        for k in range(K):
            out_ref[0, k0 + k] = res[:, k * Gt:(k + 1) * Gt] - offs


def _pick_group_tile(num_groups):
    """Lane tile over groups: 256 on big-VMEM parts (v5e/v6e), else 128."""
    try:
        big_vmem = pltpu.get_tpu_info().vmem_capacity_bytes >= (100 << 20)
    except Exception:
        big_vmem = False
    if big_vmem and num_groups % 256 == 0:
        return 256
    if num_groups % 128 == 0:
        return 128
    return num_groups


def _pick_slot_chunk(group_size, num_points, group_tile, budget_bytes=8 << 20):
    """# of ball-query slots gathered per MXU matmul (one-hot RHS <= budget)."""
    per_slot = max(num_points * group_tile * 4, 1)
    k = int(max(1, min(group_size, budget_bytes // per_slot)))
    while group_size % k:
        k -= 1
    return k


# ------------------------------- wrapper -----------------------------------
def subsample_group(p, x, *, num_groups, group_size, radius, group_tile=None):
    """p: (B, N, 3) xyz, x: (B, C, N) features.  Mirrors SubsampleGroup.forward
    with subsample='fps', group='ballquery'."""
    B, N, _ = p.shape
    C = x.shape[1]
    G, S = num_groups, group_size

    p = p.astype(jnp.float32)
    p_t = jnp.transpose(p, (0, 2, 1))                        # (B, 3, N) glue
    idx = furthest_point_sample(p_t, G)                      # (B, 1, G) int32

    # fused, 8-row-aligned gather LHS: [xyz(3) | zeros(5) | features(C)]
    px = jnp.concatenate(
        [p_t, jnp.zeros((B, 5, N), jnp.float32), x.astype(jnp.float32)], axis=1)
    R = 8 + C

    Gt = group_tile if group_tile is not None else _pick_group_tile(G)
    assert G % Gt == 0 and (Gt == G or Gt % 128 == 0)
    K = _pick_slot_chunk(S, N, Gt)

    kernel = functools.partial(_group_kernel, radius=float(radius),
                               group_size=S, slot_chunk=K)
    slab, cen = pl.pallas_call(
        kernel,
        out_shape=(
            jax.ShapeDtypeStruct((B, S, R, G), jnp.float32),  # per-slot slab
            jax.ShapeDtypeStruct((B, R, G), jnp.float32),     # center slab
        ),
        grid=(B, G // Gt),
        in_specs=[
            pl.BlockSpec((1, 1, Gt), lambda b, g: (b, 0, g)),
            pl.BlockSpec((1, R, N), lambda b, g: (b, 0, 0)),
        ],
        out_specs=(
            pl.BlockSpec((1, S, R, Gt), lambda b, g: (b, 0, 0, g)),
            pl.BlockSpec((1, R, Gt), lambda b, g: (b, 0, g)),
        ),
        compiler_params=pltpu.CompilerParams(
            # batch axis parallel (megacore splits there); group-tile axis kept
            # sequential so the per-batch-constant px block is not duplicated
            # across cores (v7x has only 64 MiB VMEM per TensorCore).
            dimension_semantics=("parallel", "arbitrary"),
            vmem_limit_bytes=48 * 1024 * 1024,
        ),
    )(idx, px)

    # glue slices/transposes back to the PyTorch module's layouts
    grouped_p = jnp.transpose(slab[:, :, 0:3, :], (0, 2, 3, 1))        # (B,3,G,S)
    fj = jnp.transpose(slab[:, :, 8:8 + C, :], (0, 2, 3, 1)).astype(x.dtype)
    center_p = jnp.transpose(cen[:, 0:3, :], (0, 2, 1))                # (B,G,3)
    center_x = cen[:, 8:8 + C, :][..., None].astype(x.dtype)           # (B,C,G,1)
    return grouped_p, center_p, fj, center_x


if __name__ == "__main__":
    key = jax.random.PRNGKey(0)
    kp, kx = jax.random.split(key)
    B, N, C = 2, 64, 4          # batch, num points, feature channels
    G, S, radius = 8, 8, 0.25   # num_groups, group_size, ball radius

    p = jax.random.uniform(kp, (B, N, 3), dtype=jnp.float32)
    x = jax.random.normal(kx, (B, C, N), dtype=jnp.float32)

    outs = subsample_group(p, x, num_groups=G, group_size=S, radius=radius)
    outs = jax.block_until_ready(outs)
    grouped_p, center_p, fj, center_x = outs

    assert grouped_p.shape == (B, 3, G, S)
    assert center_p.shape == (B, G, 3)
    assert fj.shape == (B, C, G, S)
    assert center_x.shape == (B, C, G, 1)
    assert all(bool(jnp.all(jnp.isfinite(o))) for o in outs)
    # FPS always starts from point 0 -> first center is point 0 exactly
    assert bool(jnp.all(center_p[:, 0, :] == p[:, 0, :]))
    # every grouped point lies inside the ball (relative xyz norm < radius)
    dist2 = jnp.sum(grouped_p * grouped_p, axis=1)
    assert bool(jnp.all(dist2 <= radius * radius + 1e-5))
    print("KERNEL_OK")
</pallas_src>

<mosaic_0001>
module attributes {stable_mosaic.version = 11 : i64} {
  func.func @_fps_kernel(%arg0: i32, %arg1: memref<1x3x64xf32, #tpu.memory_space<smem>>, %arg2: memref<1x24x8xf32, #tpu.memory_space<vmem>>, %arg3: memref<1x1x8xi32, #tpu.memory_space<smem>>) attributes {dimension_semantics = [#tpu.dimension_semantics<parallel>], iteration_bounds = array<i64: 2>, scalar_prefetch = 0 : i64, scratch_operands = 0 : i64, tpu.core_type = #tpu.core_type<tc>, window_params = [{transform_indices = @transform_0, window_bounds = array<i64: 1, 3, 64>}, {transform_indices = @transform_1, window_bounds = array<i64: 1, 24, 8>}, {transform_indices = @transform_2, window_bounds = array<i64: 1, 1, 8>}]} {
    %c0 = arith.constant 0 : index
    %c0_0 = arith.constant 0 : index
    %c0_1 = arith.constant 0 : index
    %0 = vector.load %arg2[%c0, %c0_0, %c0_1] : memref<1x24x8xf32, #tpu.memory_space<vmem>>, vector<1x8x8xf32>
    %1 = vector.shape_cast %0 : vector<1x8x8xf32> to vector<8x8xf32>
    %c0_2 = arith.constant 0 : index
    %c8 = arith.constant 8 : index
    %c0_3 = arith.constant 0 : index
    %2 = vector.load %arg2[%c0_2, %c8, %c0_3] : memref<1x24x8xf32, #tpu.memory_space<vmem>>, vector<1x8x8xf32>
    %3 = vector.shape_cast %2 : vector<1x8x8xf32> to vector<8x8xf32>
    %c0_4 = arith.constant 0 : index
    %c16 = arith.constant 16 : index
    %c0_5 = arith.constant 0 : index
    %4 = vector.load %arg2[%c0_4, %c16, %c0_5] : memref<1x24x8xf32, #tpu.memory_space<vmem>>, vector<1x8x8xf32>
    %5 = vector.shape_cast %4 : vector<1x8x8xf32> to vector<8x8xf32>
    %6 = tpu.iota {dimensions = array<i32: 0>} : vector<8x8xi32>
    %c8_i32 = arith.constant 8 : i32
    %7 = vector.broadcast %c8_i32 : i32 to vector<8x8xi32>
    %8 = arith.muli %6, %7 : vector<8x8xi32>
    %9 = tpu.iota {dimensions = array<i32: 1>} : vector<8x8xi32>
    %10 = arith.addi %8, %9 : vector<8x8xi32>
    %c0_i32 = arith.constant 0 : i32
    %c0_6 = arith.constant 0 : index
    %c0_7 = arith.constant 0 : index
    %c0_8 = arith.constant 0 : index
    %11 = memref.load %arg3[%c0_6, %c0_7, %c0_8] : memref<1x1x8xi32, #tpu.memory_space<smem>>
    memref.store %c0_i32, %arg3[%c0_6, %c0_7, %c0_8] : memref<1x1x8xi32, #tpu.memory_space<smem>>
    %cst = arith.constant 0x7F800000 : f32
    %12 = vector.broadcast %cst : f32 to vector<8x8xf32>
    %c0_i32_9 = arith.constant 0 : i32
    %c1_i32 = arith.constant 1 : i32
    %c7_i32 = arith.constant 7 : i32
    %13 = arith.addi %c1_i32, %c7_i32 : i32
    %c1_i32_10 = arith.constant 1 : i32
    %14:2 = scf.for %arg4 = %c1_i32 to %13 step %c1_i32_10 iter_args(%arg5 = %12, %arg6 = %c0_i32_9) -> (vector<8x8xf32>, i32)  : i32 {
      %c0_12 = arith.constant 0 : index
      %c0_13 = arith.constant 0 : index
      %15 = arith.index_cast %arg6 : i32 to index
      %16 = memref.load %arg1[%c0_12, %c0_13, %15] : memref<1x3x64xf32, #tpu.memory_space<smem>>
      %c0_14 = arith.constant 0 : index
      %c1 = arith.constant 1 : index
      %17 = arith.index_cast %arg6 : i32 to index
      %18 = memref.load %arg1[%c0_14, %c1, %17] : memref<1x3x64xf32, #tpu.memory_space<smem>>
      %c0_15 = arith.constant 0 : index
      %c2 = arith.constant 2 : index
      %19 = arith.index_cast %arg6 : i32 to index
      %20 = memref.load %arg1[%c0_15, %c2, %19] : memref<1x3x64xf32, #tpu.memory_space<smem>>
      %21 = vector.broadcast %16 : f32 to vector<8x8xf32>
      %22 = arith.subf %1, %21 : vector<8x8xf32>
      %23 = vector.broadcast %18 : f32 to vector<8x8xf32>
      %24 = arith.subf %3, %23 : vector<8x8xf32>
      %25 = vector.broadcast %20 : f32 to vector<8x8xf32>
      %26 = arith.subf %5, %25 : vector<8x8xf32>
      %27 = arith.mulf %22, %22 : vector<8x8xf32>
      %28 = arith.mulf %24, %24 : vector<8x8xf32>
      %29 = arith.addf %27, %28 : vector<8x8xf32>
      %30 = arith.mulf %26, %26 : vector<8x8xf32>
      %31 = arith.addf %29, %30 : vector<8x8xf32>
      %32 = arith.minimumf %arg5, %31 : vector<8x8xf32>
      %33 = vector.shape_cast %32 : vector<8x8xf32> to vector<1x8x8xf32>
      %cst_16 = arith.constant dense<0xFF800000> : vector<1xf32>
      %34 = vector.multi_reduction <maximumf>, %33, %cst_16 [1, 2] : vector<1x8x8xf32> to vector<1xf32>
      %35 = vector.shape_cast %34 : vector<1xf32> to vector<1x1x1xf32>
      %36 = vector.extract %35[0, 0, 0] : f32 from vector<1x1x1xf32>
      %37 = vector.broadcast %36 : f32 to vector<8x8xf32>
      %38 = arith.cmpf oeq, %32, %37 : vector<8x8xf32>
      %c64_i32 = arith.constant 64 : i32
      %39 = vector.broadcast %c64_i32 : i32 to vector<8x8xi32>
      %40 = arith.select %38, %10, %39 : vector<8x8xi1>, vector<8x8xi32>
      %41 = vector.shape_cast %40 : vector<8x8xi32> to vector<1x8x8xi32>
      %cst_17 = arith.constant dense<2147483647> : vector<1xi32>
      %42 = vector.multi_reduction <minsi>, %41, %cst_17 [1, 2] : vector<1x8x8xi32> to vector<1xi32>
      %43 = vector.shape_cast %42 : vector<1xi32> to vector<1x1x1xi32>
      %44 = vector.extract %43[0, 0, 0] : i32 from vector<1x1x1xi32>
      %c0_18 = arith.constant 0 : index
      %c0_19 = arith.constant 0 : index
      %45 = arith.index_cast %arg4 : i32 to index
      %46 = memref.load %arg3[%c0_18, %c0_19, %45] : memref<1x1x8xi32, #tpu.memory_space<smem>>
      memref.store %44, %arg3[%c0_18, %c0_19, %45] : memref<1x1x8xi32, #tpu.memory_space<smem>>
      scf.yield %32, %44 : vector<8x8xf32>, i32
    }
    %c7_i32_11 = arith.constant 7 : i32
    return
  }
  func.func @transform_0(%arg0: i32) -> (i32, i32, i32) {
    %c0_i32 = arith.constant 0 : i32
    %c0_i32_0 = arith.constant 0 : i32
    %c0_i32_1 = arith.constant 0 : i32
    return %arg0, %c0_i32, %c0_i32_0 : i32, i32, i32
  }
  func.func @transform_1(%arg0: i32) -> (i32, i32, i32) {
    %c0_i32 = arith.constant 0 : i32
    %c0_i32_0 = arith.constant 0 : i32
    %c0_i32_1 = arith.constant 0 : i32
    return %arg0, %c0_i32, %c0_i32_0 : i32, i32, i32
  }
  func.func @transform_2(%arg0: i32) -> (i32, i32, i32) {
    %c0_i32 = arith.constant 0 : i32
    %c0_i32_0 = arith.constant 0 : i32
    %c0_i32_1 = arith.constant 0 : i32
    return %arg0, %c0_i32, %c0_i32_0 : i32, i32, i32
  }
}

</mosaic_0001>

<bundles_post_ra>
// kernel: tpu_custom_call.1
= control target key start
LH: loop header
LB: loop body
LE: loop exit
PB: predicated region body
PF: predicated region fallthrough
CT: control target
= control target key end

     0   :  { %7 = vsyncpa [#allocation4], 0  ;;  %s741_s0 = inlined_call_operand.vmem [shape: f32[2,3,64], index: 0, kind: input, shape index: {}]   ;;  %s742_s1 = inlined_call_operand.vmem [shape: f32[2,24,8], index: 1, kind: input, shape index: {}]   ;;  %s743_s2 = inlined_call_operand.hbm [shape: s32[2,1,8], index: 2, kind: output, shape index: {}]  }
   0x1   :  { %9 = vsyncpa [#allocation4 + $0x1], 0 }
   0x2   :  { %10 = vsyncpa [#allocation3], 0 }
   0x3   :  { %12 = vsyncpa [#allocation3 + $0x1], 0  ;;  %s571_s9 = smov 0   ;;  %s573_s10 = smov 0  }
   0x4   :  { %s575_s11 = smov 0   ;;  %s577_s12 = smov 0  }
   0x5 LB: > { %s592_s13 = sadd.s32 4294967295, %s541_s12   ;;  %s372_s14 = sadd.s32 4294967294, %s541_s12   ;;  %s541_s12 = sphi %s577_s12, %s753_s12   ;;  %s537_s11 = sphi %s575_s11, %s752_s11   ;;  %s533_s10 = sphi %s573_s10, %s751_s10   ;;  %s529_s9 = sphi %s571_s9, %s750_s9  }
   0x6   : > { %s596_s15 = sadd.s32 1, %s541_s12   ;;  %s25_s16 = sadd.s32 1, %s537_s11 }
   0x7   : > { %s22_s17 = ssub.s32 %s541_s12, %s596_s15  ;;  %p32_p0 = scmp.ne.s32.totalorder %s537_s11, %s533_s10 }
   0x8   : > { %p23_p1 = scmp.eq.s32.totalorder %s22_s17, 0  ;;  %p33_p2 = scmp.eq.s32.totalorder %s541_s12, 0 }
   0x9   : > { %p38_p3 = scmp.ne.s32.totalorder %s533_s10, %s529_s9  ;;  %p39_p4 = scmp.eq.s32.totalorder %s592_s13, 0 }
   0xa   : > { %s608_s18 = scalar_select %p23_p1, %s537_s11, %s25_s16  }
   0xb   : > { %p34_p5 = por %p33_p2, %p32_p0  ;;  %p610_p6 = por %p39_p4, %p38_p3 }
   0xc   : > { %p88_p7 = scmp.eq.s32.totalorder %s592_s13, 1  ;;  %p94_p8 = scmp.eq.s32.totalorder %s372_s14, 1 }
   0xd   : > { %p744_p9 = scmp.lt.s32.totalorder %s541_s12, 2  ;;  %s114_s22 = sand.u32 1, %s537_s11  }
   0xe   : > { %p616_p10 = por %p88_p7, %p32_p0  ;;  %p620_p11 = por %p94_p8, %p38_p3 }
   0xf   : > { %s376_s23 = sshll.u32 %s541_s12, 2  ;;  %s375_s24 = sshll.u32 %s114_s22, 9 }
  0x10   : > { %s123_s27 = scalar_lea.vmem %s741_s0, %s376_s23  ;;  %p631_p12 = pnand %p744_p9, %p34_p5 }
  0x11   : > { %s125_s28 = sshll.u32 %s123_s27, 4  ;;  %p377_p13 = scmp.ge.s32.totalorder %s541_s12, 1  ;;  %s126_s28 = int_to_ptr.vmem [resolvable:$true] %s125_s28 }
  0x12   : > { %p138_p0 = scmp.lt.s32.totalorder %s541_s12, 3  ;;  %s118_s30 = scalar_lea.smem [#allocation2], %s375_s24 }
  0x13   : > { %s115_s3 = scalar_lea.sflag [#allocation4], %s114_s22  ;;  %s462_s4 = scalar_lea.vmem %s126_s28, 64 }
  0x14   : > { %p463_p1 = scmp.ne.s32.totalorder %s126_s28, %s462_s4  ;;  %p464_p2 = pneg %p631_p12 }
  0x15   : > { %s467_s7 = sshll.u32 %s741_s0, 4  ;;  %s468_s7 = int_to_ptr.vmem [resolvable:$false] %s467_s7 }
  0x16   : > { %p465_p3 = pnand %p464_p2, %p463_p1  ;;  %s469_s8 = scalar_lea.vmem %s468_s7, 128 }
  0x17   : > { %p470_p5 = scmp.lt.s32.totalorder %s126_s28, %s468_s7  ;;  %p471_p7 = scmp.lt.s32.totalorder %s469_s8, %s462_s4 }
  0x18   : > { %p466_p4 = pneg %p465_p3 }
  0x19   : > { %p472_p8 = por %p471_p7, %p470_p5 }
  0x1b   : > { %p473_p9 = pnand %p472_p8, %p466_p4 }
  0x1d   : > { %476 = shalt.err (!%p473_p9)
}
  0x1e   : > { %403 = dma.vmem_to_smem (!%p631_p12), %s126_s28, 64, %s118_s30, %s115_s3  }
  0x1f   : > { %p139_p1 = pnand %p377_p13, %p138_p0 }
  0x20   : > { %s649_s14 = sand.u32 (!%p139_p1), 1, %s533_s10  }
  0x21   : > { %142 = sbr.rel (%p139_p1) target bundleno = 640 (0x280), region = 28  ;;  %s378_s16 = sshll.u32 (!%p139_p1), %s649_s14, 9 }
  0x22   : > { %s145_s17 = scalar_lea.sflag (!%p139_p1), [#allocation4], %s649_s14  ;;  %s653_s22 = scalar_lea.smem (!%p139_p1), [#allocation2], %s378_s16 }
  0x28   : > { %520 = dma.done.wait (%p610_p6), %s145_s17, 64  }
  0x29   : > { %522 = vsyncadd (%p610_p6), %s145_s17, 4294967232 }
  0x2a   : > { %153 = sfence }
  0x2b   : > { %s379_s23 = sshll.u32 %s649_s14, 7  ;;  %p175_p9 = scmp.lt.s32.totalorder %s592_s13, 1  ;;  %v183_v0 = vlaneseq  ;;  %v678_v8 = vmov inf  }
  0x2c   : > { %s662_s25 = scalar_lea.smem [#allocation5], %s379_s23  ;;  %s555_s26 = smov 0  }
  0x2d   : > { %s176_s24 = scalar_select %p175_p9, %s592_s13, 1  ;;  %v184_v1 = vshrl.u32 %v183_v0, 7  ;;  %v187_v2 = vand.u32 127, %v183_v0 }
  0x2e   : > { %190 = sst [smem:[%s662_s25]] %s555_s26  ;;  %s676_s30 = smov 0  }
  0x2f   : > { %s391_s27 = smul.u32 24, %s176_s24  ;;  %v185_v3 = vmul.u32 8, %v184_v1  ;;  %s680_s3 = smov 1  }
  0x31   : > { %s179_s29 = scalar_lea.vmem %s742_s1, %s391_s27  ;;  %v668_v4 = vadd.s32 %v187_v2, %v185_v3 }
  0x32   : > { %v670_v5 = vld [vmem:[%s179_s29] sm:$0xff]  ;;  %v672_v6 = vld [vmem:[%s179_s29 + $0x8] sm:$0xff]  ;;  %v674_v7 = vld [vmem:[%s179_s29 + $0x10] sm:$0xff] }
  0x33 LB: >> { %s199_s4 = sld [smem:[%s653_s22 + %s545_s30]]  ;;  %s200_s5 = sshra.s32 %s545_s30, 7  ;;  %vm224_vm0 = vcmask 64512   ;;  %s553_s3 = sphi %s680_s3, %s196_s3   ;;  %v549_v8 = vphi %v678_v8, %v223_v8   ;;  %s545_s30 = sphi %s676_s30, %s395_s30  }
  0x34   : >> { %s387_s6 = sshll.u32 %s200_s5, 7  ;;  %s205_s7 = sand.u32 127, %s545_s30 }
  0x35   : >> { %s388_s8 = sadd.s32 128, %s387_s6  ;;  %s390_s16 = sadd.s32 256, %s387_s6 }
  0x36   : >> { %s206_s17 = sadd.s32 %s388_s8, %s205_s7  ;;  %s210_s23 = sadd.s32 %s390_s16, %s205_s7 }
  0x37   : >> { %s207_s24 = sld [smem:[%s653_s22 + %s206_s17]]  ;;  %s263_s28 = scalar_lea.smem %s662_s25, %s553_s3 [#allocation5] }
  0x38   : >> { %s211_s26 = sld [smem:[%s653_s22 + %s210_s23]]  ;;  %s196_s3 = sadd.s32 1, %s553_s3  }
  0x39   : >> { %v212_v9 = vstv %s199_s4  ;;  %p193_p6 = scmp.ge.s32.totalorder %s196_s3, 8  }
  0x3a   : >> { %v213_v10 = vsub.f32 %v670_v5, %v212_v9  ;;  %s384_s19 = sshll.u32 (%p193_p6), %s592_s13, 4  ;;  %s266_s6 = scalar_lea.sflag (%p193_p6), [#allocation3], %s649_s14 }
  0x3b   : > { %s277_s5 = scalar_lea.hbm (%p193_p6), %s743_s2, %s384_s19  ;;  %s481_s17 = scalar_lea.hbm (%p193_p6), %s743_s2, 32 }
  0x3c   : >> { %v218_v15 = vmul.f32 %v213_v10, %v213_v10  ;;  %s477_s7 = scalar_lea.hbm (%p193_p6), %s277_s5, 16  ;;  %p482_p2 = scmp.lt.u32.totalorder (%p193_p6), %s277_s5, %s743_s2 }
  0x3d   : >> { %v214_v11 = vstv %s207_s24  ;;  %p478_p12 = scmp.ne.s32.totalorder (%p193_p6), %s277_s5, %s477_s7  ;;  %p483_p3 = scmp.lt.u32.totalorder (%p193_p6), %s481_s17, %s477_s7 }
  0x3e   : >> { %v216_v12 = vstv %s211_s26  ;;  %v215_v13 = vsub.f32 %v672_v6, %v214_v11  ;;  %p485_p5 = scmp.lt.u32.totalorder (%p193_p6), %s477_s7, %s277_s5 }
  0x3f   : >> { %v217_v14 = vsub.f32 %v674_v7, %v216_v12  ;;  %p479_p13 = pnand (%p193_p6), %p478_p12, %p616_p10  ;;  %p484_p4 = por (%p193_p6), %p483_p3, %p482_p2 }
  0x40   : >> { %v219_v16 = vmul.f32 %v215_v13, %v215_v13 }
  0x41   : >> { %v221_v17 = vmul.f32 %v217_v14, %v217_v14  ;;  %p480_p0 = pneg (%p193_p6), %p479_p13  ;;  %p486_p7 = por (%p193_p6), %p485_p5, %p484_p4 }
  0x42   : >> { %v220_v18 = vadd.f32 %v219_v16, %v218_v15 }
  0x43   : > { %p487_p8 = pnand (%p193_p6), %p486_p7, %p480_p0 }
  0x44   : >> { %v222_v19 = vadd.f32 %v221_v17, %v220_v18 }
  0x46   : >> { %v223_v8 = vmin.f32 %v549_v8, %v222_v19  }
  0x48   : >> { %v225_v20 = vsel %vm224_vm0, %v223_v8, -inf }
  0x49   : >> { %226 = vmax.xlane.f32.xlu0 %v225_v20 }
  0xd6   : >> { %v227_v21 = vpop.xlane.xlu0 %226 }
  0xd7   : >> { %v228_v22 = vrot.slane %v227_v21, 4 }
  0xd9   : >> { %v229_v23 = vmax.f32 %v227_v21, %v228_v22 }
  0xdb   : >> { %v230_v24 = vrot.slane %v229_v23, 2 }
  0xdd   : >> { %v231_v25 = vmax.f32 %v229_v23, %v230_v24 }
  0xdf   : >> { %v232_v26 = vrot.slane %v231_v25, 1 }
  0xe1   : >> { %v233_v27 = vmax.f32 %v231_v25, %v232_v26 }
  0xe3   : >> { %392 = vpush %v233_v27 }
 0x114   : >> { %s393_s27 = spop %392 }
 0x115   : >> { %v235_v28 = vstv %s393_s27 }
 0x116   : >> { %vm236_vm1 = vcmp.eq.f32.partialorder %v223_v8, %v235_v28 }
 0x117   : >> { %v237_v29 = vsel %vm236_vm1, %v668_v4, 64 }
 0x118   : >> { %v238_v30 = vsel %vm224_vm0, %v237_v29, 2147483647 }
 0x119   : >> { %v240_v31 = vshra.s32 %v238_v30, 16  ;;  %v239_v33 = vand.u32 65535, %v238_v30 }
 0x11b   : >> { %v242_v32 = vcvt.s32.f32 %v240_v31  ;;  %v241_v35 = vcvt.s32.f32 %v239_v33 }
 0x11d   : >> { %243 = vmin.xlane.f32.xlu0 %v242_v32 }
 0x1aa   : >> { %v244_v34 = vpop.xlane.xlu0 %243 }
 0x1ab   : >> { %vm245_vm2 = vcmp.eq.f32.partialorder %v242_v32, %v244_v34  ;;  %v250_v37 = vcvt.f32.s32 %v244_v34 }
 0x1ac   : >> { %v246_v36 = vsel %vm245_vm2, %v241_v35, inf }
 0x1ad   : >> { %247 = vmin.xlane.f32.xlu1 %v246_v36  ;;  %v251_v39 = vshll.u32 %v250_v37, 16 }
 0x23a   : >> { %v248_v38 = vpop.xlane.xlu1 %247 }
 0x23b   : >> { %v249_v40 = vcvt.f32.s32 %v248_v38 }
 0x23d   : >> { %v252_v41 = vadd.s32 %v251_v39, %v249_v40 }
 0x23f   : >> { %v253_v42 = vrot.slane %v252_v41, 4 }
 0x241   : >> { %vm254_vm3 = vcmp.lt.s32.totalorder %v252_v41, %v253_v42 }
 0x242   : >> { %v255_v43 = vsel %vm254_vm3, %v252_v41, %v253_v42 }
 0x243   : >> { %v256_v44 = vrot.slane %v255_v43, 2 }
 0x245   : >> { %vm257_vm4 = vcmp.lt.s32.totalorder %v255_v43, %v256_v44 }
 0x246   : >> { %v258_v45 = vsel %vm257_vm4, %v255_v43, %v256_v44 }
 0x247   : >> { %v259_v46 = vrot.slane %v258_v45, 1 }
 0x249   : >> { %vm260_vm5 = vcmp.lt.s32.totalorder %v258_v45, %v259_v46 }
 0x24a   : >> { %v261_v47 = vsel %vm260_vm5, %v258_v45, %v259_v46 }
 0x24b   : >> { %394 = vpush %v261_v47 }
 0x277   : > { %195 = sbr.rel (!%p193_p6) target bundleno = 51 (0x33), region = 85 }
 0x27c   : >> { %s395_s30 = spop %394  }
 0x27d   : >> { %264 = sst [smem:[%s263_s28]] %s395_s30 }
 0x27e   : > { %490 = shalt.err (!%p487_p8)
}
 0x27f   : > { %398 = dma.smem_to_hbm (%p616_p10), %s662_s25, 16, %s277_s5, %s266_s6  }
 0x280 PF: > { %p749_p1 = scmp.lt.s32.totalorder %s541_s12, 2 }
 0x281   : > { %s289_s13 = sand.u32 (!%p749_p1), 1, %s529_s9  }
 0x282   : > { %284 = sbr.rel (%p749_p1) target bundleno = 652 (0x28c), region = 47  ;;  %s290_s14 = scalar_lea.sflag (!%p749_p1), [#allocation3], %s289_s13 }
 0x289   : > { %524 = dma.done.wait (%p620_p11), %s290_s14, 16  }
 0x28a   : > { %526 = vsyncadd (%p620_p11), %s290_s14, 4294967280 }
 0x28b   : > { %295 = sfence }
 0x28c PF: > { %p15_p10 = scmp.ge.s32.totalorder %s596_s15, 4   ;;  %s750_s9 = smov %s533_s10 }
 0x28d   : > { %s751_s10 = smov %s537_s11  ;;  %s752_s11 = smov %s608_s18 }
 0x28e   : > { %s753_s12 = smov %s596_s15  ;;  %17 = sbr.rel (!%p15_p10) target bundleno = 5 (0x5), region = 96 }
 0x295   :  { %296 = vsyncpa [#allocation3], 1 }
 0x296   :  { %298 = vsyncpa [#allocation3 + $0x1], 1 }
 0x297   :  { %299 = vsyncpa [#allocation4], 1 }
 0x298   :  { %301 = vsyncpa [#allocation4 + $0x1], 1 }

</bundles_post_ra>
